<compile_context>
chip_gen: v5e
topology: v5e:2x2
jax: 0.10.0
libtpu: 0.0.40
codegen_flags: <defaults>
</compile_context>

<pallas_src>
import jax
import jax.numpy as jnp
from jax.experimental import pallas as pl
from jax.experimental.pallas import tpu as pltpu

LANE = 128
SUBLANE = 8
CHUNK_ROWS = 256                         # inner-chunk rows (f32 temps ~= 32 vregs)
DEFAULT_BLOCK_BYTES = 4 * 1024 * 1024    # per-input block byte budget
VMEM_LIMIT_BYTES = 32 * 1024 * 1024      # explicit scoped-VMEM budget


def _round_up(x, m):
    return ((x + m - 1) // m) * m


def _make_mse_kernel(*, rows, block_rows, chunk_rows, steps_per_core,
                     g_edge, needs_mask):
    """Build the kernel closure (all sizing params are static Python ints)."""
    n_chunks = block_rows // chunk_rows

    def kernel(yp_ref, y_ref, o_ref, acc_ref):
        c = pl.program_id(0)          # core-split axis ("parallel")
        j = pl.program_id(1)          # streaming/reduction axis ("arbitrary")

        @pl.when(j == 0)
        def _():
            acc_ref[...] = jnp.zeros_like(acc_ref)

        # Nominal global block index / first row.  The mask uses the nominal
        # index (not the clamped DMA index), so duplicated data loaded by a
        # fully out-of-range block is zeroed out entirely.
        g = c * steps_per_core + j
        row0 = g * block_rows

        def chunk_partial(row_start, masked):
            a = yp_ref[pl.ds(row_start, chunk_rows), :].astype(jnp.float32)
            b = y_ref[pl.ds(row_start, chunk_rows), :].astype(jnp.float32)
            d = a - b
            sq = d * d
            if masked:
                ridx = row0 + row_start + jax.lax.broadcasted_iota(
                    jnp.int32, (chunk_rows, LANE), 0)
                sq = jnp.where(ridx < rows, sq, 0.0)
            # Fold the chunk down to an (8,128) vreg partial (VPU-only adds).
            return jnp.sum(sq.reshape(chunk_rows // SUBLANE, SUBLANE, LANE),
                           axis=0)

        def accumulate(masked):
            if n_chunks == 1:
                part = chunk_partial(0, masked)
            else:
                def body(t, p):
                    start = pl.multiple_of(t * chunk_rows, chunk_rows)
                    return p + chunk_partial(start, masked)
                part = jax.lax.fori_loop(
                    0, n_chunks, body,
                    jnp.zeros((SUBLANE, LANE), jnp.float32))
            acc_ref[...] += part

        if not needs_mask:
            accumulate(False)
        elif g_edge <= 0:
            accumulate(True)
        else:
            # Gate the mask cost to the blocks at/after the ragged boundary.
            @pl.when(g < g_edge)
            def _():
                accumulate(False)

            @pl.when(g >= g_edge)
            def _():
                accumulate(True)

        @pl.when(j == pl.num_programs(1) - 1)
        def _():
            # Dump the per-core (8,128) partial-sum slab (lane-dense output);
            # the tiny final reduce + mean divide happen in the wrapper.
            o_ref[...] = acc_ref[...]

    return kernel


def mse_loss(y_predict, y, *, block_bytes=DEFAULT_BLOCK_BYTES, num_core_splits=2):
    """Pallas equivalent of nn.MSELoss()(y_predict, y) (mean reduction)."""
    assert y_predict.shape == y.shape, "MSELoss requires matching shapes"
    n_elem = int(y_predict.size)
    assert n_elem > 0
    out_dtype = jnp.promote_types(y_predict.dtype, y.dtype)

    yp_flat = jnp.ravel(y_predict)
    y_flat = jnp.ravel(y)

    rows = pl.cdiv(n_elem, LANE)
    lane_pad = rows * LANE - n_elem
    if lane_pad:
        # TODO(synk): unaligned sizes pay one extra HBM pass for this pad copy;
        # typical NCHW inputs are 128-aligned and take the zero-copy path.
        yp_flat = jnp.pad(yp_flat, (0, lane_pad))
        y_flat = jnp.pad(y_flat, (0, lane_pad))
    yp2d = yp_flat.reshape(rows, LANE)
    y2d = y_flat.reshape(rows, LANE)

    # --- dtype-aware block sizing (byte budget, packed-sublane multiples) ---
    item_p = jnp.dtype(y_predict.dtype).itemsize
    item_t = jnp.dtype(y.dtype).itemsize
    itemsize = max(item_p, item_t)
    sub_mult = SUBLANE * max(1, 4 // min(item_p, item_t))  # 8 f32 / 16 bf16 / 32 i8
    rows_rounded = _round_up(rows, sub_mult)

    if rows_rounded <= CHUNK_ROWS:
        block_rows = rows_rounded
        chunk_rows = block_rows
    else:
        max_rows = max(CHUNK_ROWS,
                       (block_bytes // (LANE * itemsize)) // CHUNK_ROWS * CHUNK_ROWS)
        block_rows = min(max_rows, _round_up(rows_rounded, CHUNK_ROWS))
        chunk_rows = CHUNK_ROWS

    n_blocks = pl.cdiv(rows, block_rows)
    num_splits = num_core_splits if n_blocks >= num_core_splits else 1
    steps_per_core = pl.cdiv(n_blocks, num_splits)
    total_blocks = num_splits * steps_per_core

    needs_mask = total_blocks * block_rows != rows
    g_edge = rows // block_rows          # first block index that needs masking

    kernel = _make_mse_kernel(rows=rows, block_rows=block_rows,
                              chunk_rows=chunk_rows,
                              steps_per_core=steps_per_core,
                              g_edge=g_edge, needs_mask=needs_mask)

    def in_map(c, j):
        g = c * steps_per_core + j
        return (jnp.minimum(g, n_blocks - 1), 0)   # clamp fully-OOB blocks

    cost = pl.CostEstimate(
        flops=3 * n_elem,
        transcendentals=0,
        bytes_accessed=n_elem * (item_p + item_t)
        + num_splits * SUBLANE * LANE * 4,
    )

    partials = pl.pallas_call(
        kernel,
        out_shape=jax.ShapeDtypeStruct((num_splits * SUBLANE, LANE), jnp.float32),
        grid_spec=pltpu.PrefetchScalarGridSpec(
            num_scalar_prefetch=0,
            grid=(num_splits, steps_per_core),
            in_specs=[
                pl.BlockSpec((block_rows, LANE), in_map),
                pl.BlockSpec((block_rows, LANE), in_map),
            ],
            out_specs=pl.BlockSpec((SUBLANE, LANE), lambda c, j: (c, 0)),
            scratch_shapes=[pltpu.VMEM((SUBLANE, LANE), jnp.float32)],
        ),
        compiler_params=pltpu.CompilerParams(
            dimension_semantics=("parallel", "arbitrary"),
            vmem_limit_bytes=VMEM_LIMIT_BYTES,
        ),
        cost_estimate=cost,
    )(yp2d, y2d)

    total = jnp.sum(partials)
    return (total / jnp.float32(n_elem)).astype(out_dtype)


if __name__ == "__main__":
    key = jax.random.PRNGKey(0)
    k1, k2, k3, k4 = jax.random.split(key, 4)

    def check(a, b, **kw):
        loss = mse_loss(a, b, **kw)
        jax.block_until_ready(loss)
        ref = jnp.mean((a.astype(jnp.float32) - b.astype(jnp.float32)) ** 2)
        assert jnp.allclose(loss, ref, rtol=1e-5, atol=1e-6), (loss, ref)

    # 1) NCHW-style aligned input (single block, single chunk).
    yp = jax.random.normal(k1, (2, 4, 16, 16), dtype=jnp.float32)
    yt = jax.random.normal(k2, (2, 4, 16, 16), dtype=jnp.float32)
    check(yp, yt)

    # 2) Tiny odd-sized input (lane pad + fully-masked edge block).
    yp_odd = jax.random.normal(k3, (3, 5, 7), dtype=jnp.float32)
    yt_odd = jax.random.normal(k4, (3, 5, 7), dtype=jnp.float32)
    check(yp_odd, yt_odd)

    # 3) Medium aligned input: exercises the chunked fori_loop path.
    ka, kb = jax.random.split(k3)
    yp_m = jax.random.normal(ka, (4, 4, 64, 64), dtype=jnp.float32)
    yt_m = jax.random.normal(kb, (4, 4, 64, 64), dtype=jnp.float32)
    check(yp_m, yt_m)

    # 4) Unaligned input with a small block budget: exercises the 2-way
    #    core-split grid, block clamping, and the gated edge-row mask.
    kc, kd = jax.random.split(k4)
    yp_s = jax.random.normal(kc, (3, 5, 40, 67), dtype=jnp.float32)
    yt_s = jax.random.normal(kd, (3, 5, 40, 67), dtype=jnp.float32)
    check(yp_s, yt_s, block_bytes=16 * 1024)

    print("KERNEL_OK")
</pallas_src>

<mosaic_0001>
module attributes {stable_mosaic.version = 11 : i64} {
  func.func @kernel(%arg0: i32, %arg1: i32, %arg2: memref<16x128xf32, #tpu.memory_space<vmem>>, %arg3: memref<16x128xf32, #tpu.memory_space<vmem>>, %arg4: memref<8x128xf32, #tpu.memory_space<vmem>>, %arg5: memref<8x128xf32, #tpu.memory_space<vmem>>) attributes {dimension_semantics = [#tpu.dimension_semantics<parallel>, #tpu.dimension_semantics<arbitrary>], iteration_bounds = array<i64: 1, 1>, scalar_prefetch = 0 : i64, scratch_operands = 1 : i64, tpu.core_type = #tpu.core_type<tc>, window_params = [{transform_indices = @transform_0, window_bounds = array<i64: 16, 128>}, {transform_indices = @transform_1, window_bounds = array<i64: 16, 128>}, {transform_indices = @transform_2, window_bounds = array<i64: 8, 128>}]} {
    %c0_i32 = arith.constant 0 : i32
    %0 = arith.cmpi eq, %arg1, %c0_i32 : i32
    %1 = arith.extui %0 : i1 to i32
    %c0_i32_0 = arith.constant 0 : i32
    %2 = arith.cmpi ne, %1, %c0_i32_0 : i32
    scf.if %2 {
      %cst_10 = arith.constant 0.000000e+00 : f32
      %15 = vector.broadcast %cst_10 : f32 to vector<8x128xf32>
      %c0_11 = arith.constant 0 : index
      %c0_12 = arith.constant 0 : index
      %16 = vector.load %arg5[%c0_11, %c0_12] : memref<8x128xf32, #tpu.memory_space<vmem>>, vector<8x128xf32>
      tpu.vector_store %arg5[%c0_11, %c0_12], %15 {strides = array<i32>} : memref<8x128xf32, #tpu.memory_space<vmem>>, vector<8x128xf32>,
    } else {
    }
    %c0 = arith.constant 0 : index
    %c0_1 = arith.constant 0 : index
    %3 = vector.load %arg2[%c0, %c0_1] : memref<16x128xf32, #tpu.memory_space<vmem>>, vector<16x128xf32>
    %c0_2 = arith.constant 0 : index
    %c0_3 = arith.constant 0 : index
    %4 = vector.load %arg3[%c0_2, %c0_3] : memref<16x128xf32, #tpu.memory_space<vmem>>, vector<16x128xf32>
    %5 = arith.subf %3, %4 : vector<16x128xf32>
    %6 = arith.mulf %5, %5 : vector<16x128xf32>
    %7 = vector.shape_cast %6 : vector<16x128xf32> to vector<2x8x128xf32>
    %cst = arith.constant dense<0.000000e+00> : vector<8x128xf32>
    %8 = vector.multi_reduction <add>, %7, %cst [0] : vector<2x8x128xf32> to vector<8x128xf32>
    %c0_4 = arith.constant 0 : index
    %c0_5 = arith.constant 0 : index
    %9 = vector.load %arg5[%c0_4, %c0_5] : memref<8x128xf32, #tpu.memory_space<vmem>>, vector<8x128xf32>
    %10 = arith.addf %9, %8 : vector<8x128xf32>
    %c0_6 = arith.constant 0 : index
    %c0_7 = arith.constant 0 : index
    %11 = vector.load %arg5[%c0_6, %c0_7] : memref<8x128xf32, #tpu.memory_space<vmem>>, vector<8x128xf32>
    tpu.vector_store %arg5[%c0_6, %c0_7], %10 {strides = array<i32>} : memref<8x128xf32, #tpu.memory_space<vmem>>, vector<8x128xf32>,
    %c0_i32_8 = arith.constant 0 : i32
    %12 = arith.cmpi eq, %arg1, %c0_i32_8 : i32
    %13 = arith.extui %12 : i1 to i32
    %c0_i32_9 = arith.constant 0 : i32
    %14 = arith.cmpi ne, %13, %c0_i32_9 : i32
    scf.if %14 {
      %c0_10 = arith.constant 0 : index
      %c0_11 = arith.constant 0 : index
      %15 = vector.load %arg5[%c0_10, %c0_11] : memref<8x128xf32, #tpu.memory_space<vmem>>, vector<8x128xf32>
      %c0_12 = arith.constant 0 : index
      %c0_13 = arith.constant 0 : index
      %16 = vector.load %arg4[%c0_12, %c0_13] : memref<8x128xf32, #tpu.memory_space<vmem>>, vector<8x128xf32>
      tpu.vector_store %arg4[%c0_12, %c0_13], %15 {strides = array<i32>} : memref<8x128xf32, #tpu.memory_space<vmem>>, vector<8x128xf32>,
    } else {
    }
    return
  }
  func.func @transform_0(%arg0: i32, %arg1: i32) -> (i32, i32) {
    %c1_i32 = arith.constant 1 : i32
    %0 = arith.muli %arg0, %c1_i32 : i32
    %1 = arith.addi %0, %arg1 : i32
    %c0_i32 = arith.constant 0 : i32
    %2 = arith.minsi %1, %c0_i32 : i32
    %c0_i32_0 = arith.constant 0 : i32
    %c0_i32_1 = arith.constant 0 : i32
    return %2, %c0_i32_0 : i32, i32
  }
  func.func @transform_1(%arg0: i32, %arg1: i32) -> (i32, i32) {
    %c1_i32 = arith.constant 1 : i32
    %0 = arith.muli %arg0, %c1_i32 : i32
    %1 = arith.addi %0, %arg1 : i32
    %c0_i32 = arith.constant 0 : i32
    %2 = arith.minsi %1, %c0_i32 : i32
    %c0_i32_0 = arith.constant 0 : i32
    %c0_i32_1 = arith.constant 0 : i32
    return %2, %c0_i32_0 : i32, i32
  }
  func.func @transform_2(%arg0: i32, %arg1: i32) -> (i32, i32) {
    %c0_i32 = arith.constant 0 : i32
    %c0_i32_0 = arith.constant 0 : i32
    return %arg0, %c0_i32 : i32, i32
  }
}

</mosaic_0001>

<bundles_post_ra>
// kernel: tpu_custom_call.1
= control target key start
LH: loop header
LB: loop body
LE: loop exit
PB: predicated region body
PF: predicated region fallthrough
CT: control target
= control target key end

     0   :  { %7 = vsyncpa [#allocation4], 0  ;;  %s220_s0 = inlined_call_operand.hbm [shape: f32[16,128], index: 0, kind: input, shape index: {}]   ;;  %s221_s1 = inlined_call_operand.hbm [shape: f32[16,128], index: 1, kind: input, shape index: {}]   ;;  %s222_s2 = inlined_call_operand.hbm [shape: f32[8,128], index: 2, kind: output, shape index: {}]  }
   0x1   :  { %8 = vsyncpa [#allocation7], 0 }
   0x2   :  { %9 = vsyncpa [#allocation5], 0  ;;  %s20_s11 = sshll.u32 %s220_s0, 4  ;;  %s191_s12 = smov [#allocation3]   ;;  %s21_s11 = int_to_ptr.hbm [resolvable:$true] %s20_s11 }
   0x3   :  { %s22_s13 = sshll.u32 %s191_s12, 4  ;;  %s39_s16 = sshll.u32 %s221_s1, 4  ;;  %s23_s13 = int_to_ptr.vmem [resolvable:$true] %s22_s13  ;;  %s40_s16 = int_to_ptr.hbm [resolvable:$true] %s39_s16 }
   0x4   :  { %s192_s17 = smov 128   ;;  %s193_s18 = smov 8  }
   0x5   :  { %28 = dma.hbm_to_vmem [thread:$0]  %s21_s11, 256, %s23_s13, [#allocation4], %s192_s17, %s192_s17, %s193_s18  }
   0x6   :  { %s194_s19 = smov [#allocation6]  }
   0x7   :  { %s41_s20 = sshll.u32 %s194_s19, 4  ;;  %s42_s20 = int_to_ptr.vmem [resolvable:$true] %s41_s20 }
   0x8   :  { %47 = dma.hbm_to_vmem [thread:$0]  %s40_s16, 256, %s42_s20, [#allocation7], %s192_s17, %s192_s17, %s193_s18  }
   0x9   :  { %185 = dma.done.wait [#allocation4], 256  }
   0xa   :  { %186 = vsyncadd [#allocation4], 4294967040 }
   0xb   :  { %187 = dma.done.wait [#allocation7], 256  }
   0xc   :  { %188 = vsyncadd [#allocation7], 4294967040  ;;  %v69_v0 = vld [vmem:[#allocation3] sm:$0xff]  ;;  %v70_v1 = vld [vmem:[#allocation3 + $0x8] sm:$0xff]  ;;  %s195_s0 = smov [#allocation8]   ;;  %s93_s23 = sshll.u32 %s222_s2, 4  ;;  %s94_s23 = int_to_ptr.hbm [resolvable:$true] %s93_s23 }
   0xd   :  { %v71_v2 = vld [vmem:[#allocation6] sm:$0xff]  ;;  %v72_v3 = vld [vmem:[#allocation6 + $0x8] sm:$0xff]  ;;  %s91_s1 = sshll.u32 %s195_s0, 4  ;;  %s92_s1 = int_to_ptr.vmem [resolvable:$true] %s91_s1 }
   0xe   :  { %v73_v4 = vsub.f32 %v69_v0, %v71_v2  ;;  %v74_v5 = vsub.f32 %v70_v1, %v72_v3 }
  0x10   :  { %v75_v6 = vmul.f32 %v73_v4, %v73_v4  ;;  %v76_v7 = vmul.f32 %v74_v5, %v74_v5 }
  0x12   :  { %v77_v8 = vadd.f32 %v76_v7, %v75_v6 }
  0x14   :  { %85 = vst [vmem:[#allocation8] sm:$0xff] %v77_v8 }
  0x15   :  { %96 = dma.vmem_to_hbm [thread:$0]  %s92_s1, 128, %s94_s23, [#allocation5]  }
  0x16   :  { %189 = dma.done.wait [#allocation5], 128  }
  0x17   :  { %190 = vsyncadd [#allocation5], 4294967168 }
  0x18   :  { %101 = vsyncpa [#allocation4], 1 }
  0x19   :  { %102 = vsyncpa [#allocation7], 1 }
  0x1a   :  { %103 = vsyncpa [#allocation5], 1 }

</bundles_post_ra>
